<compile_context>
chip_gen: v7x
topology: tpu7x:2x2x1
jax: 0.10.0
libtpu: 0.0.40
codegen_flags: <defaults>
</compile_context>

<pallas_src>
import functools

import jax
import jax.numpy as jnp
from jax.experimental import pallas as pl
from jax.experimental.pallas import tpu as pltpu

LAMADA = 0.001

ROW_TILE = 256        # preferred GCN-layer output-row tile (multiple of 16)
BATCH_TILE = 1024     # preferred prediction-kernel batch tile (multiple of 16)
VMEM_LIMIT = 64 * 1024 * 1024   # explicit scoped-VMEM limit (v5e default 16 MiB)


def _round_up(x, m):
    return ((x + m - 1) // m) * m


def _pick_tile(n, pref, multiple=16):
    """Largest tile <= pref that is a multiple of `multiple`.

    Multiple of 16 keeps bf16 sublane packing happy; tiny problems collapse
    to a single tile with minimal padding.
    """
    return max(multiple, min(_round_up(pref, multiple), _round_up(n, multiple)))


# ----------------------------------------------------------------------------
# GCN propagation layer kernels
# ----------------------------------------------------------------------------
def gcn_layer_kernel(adj_ref, nbr_ref, self_ref, d_ref, out_ref):
    # adj_ref:  [tR, C]  bf16 rows of the dense normalized adjacency
    # nbr_ref:  [C, D]   bf16 neighbor-side table (resident in VMEM)
    # self_ref: [tR, D]  f32 same-side embedding rows
    # d_ref:    [tR, 1]  f32 per-row degree scale
    agg = jnp.dot(adj_ref[...], nbr_ref[...],
                  preferred_element_type=jnp.float32)   # one-pass bf16 MXU, f32 acc
    out_ref[...] = jnp.maximum(agg + self_ref[...] * d_ref[...], 0.0)


def gcn_layer_fused_kernel(adj_ref, nbr_ref, self_ref, d_ref, base_ref, out_ref):
    # Second-layer variant with the 3-term epilogue fused:
    #   out = base + self + relu(adj @ nbr + self * d)
    agg = jnp.dot(adj_ref[...], nbr_ref[...],
                  preferred_element_type=jnp.float32)
    prop = jnp.maximum(agg + self_ref[...] * d_ref[...], 0.0)
    out_ref[...] = base_ref[...] + self_ref[...] + prop


def gcn_layer(adj_bf16, nbr_bf16, self_emb, d, base=None, *, row_tile):
    """out = relu(adj @ nbr + self*d)  [+ base + self if `base` is given]."""
    rows, cols = adj_bf16.shape
    dim = nbr_bf16.shape[1]
    assert rows % row_tile == 0, (rows, row_tile)
    n_tiles = rows // row_tile

    in_specs = [
        pl.BlockSpec((row_tile, cols), lambda r: (r, 0)),      # adj rows (bf16)
        pl.BlockSpec((cols, dim), lambda r: (0, 0)),           # resident nbr table
        pl.BlockSpec((row_tile, dim), lambda r: (r, 0)),       # self rows
        pl.BlockSpec((row_tile, 1), lambda r: (r, 0)),         # d
    ]
    args = [adj_bf16, nbr_bf16, self_emb, d]
    kernel = gcn_layer_kernel
    if base is not None:
        in_specs.append(pl.BlockSpec((row_tile, dim), lambda r: (r, 0)))
        args.append(base)
        kernel = gcn_layer_fused_kernel

    return pl.pallas_call(
        kernel,
        out_shape=jax.ShapeDtypeStruct((rows, dim), jnp.float32),
        grid=(n_tiles,),
        in_specs=in_specs,
        out_specs=pl.BlockSpec((row_tile, dim), lambda r: (r, 0)),
        compiler_params=pltpu.CompilerParams(
            dimension_semantics=("parallel",),
            vmem_limit_bytes=VMEM_LIMIT),
    )(*args)


def gcn_propagate(uim_bf16, ium_bf16, embed_user, embed_item, d_i, d_j,
                  *, u_tile, i_tile):
    # Neighbor-side tables are cast to bf16 in the wrapper so the resident
    # VMEM copy is half size and the kernel does a single bf16 MXU pass.
    g1u = gcn_layer(uim_bf16, embed_item.astype(jnp.bfloat16),
                    embed_user, d_i, row_tile=u_tile)
    g1i = gcn_layer(ium_bf16, embed_user.astype(jnp.bfloat16),
                    embed_item, d_j, row_tile=i_tile)
    # Second layer with the 3-term epilogue fused -> final gcn tables directly.
    gcn_users = gcn_layer(uim_bf16, g1i.astype(jnp.bfloat16),
                          g1u, d_i, base=embed_user, row_tile=u_tile)
    gcn_items = gcn_layer(ium_bf16, g1u.astype(jnp.bfloat16),
                          g1i, d_j, base=embed_item, row_tile=i_tile)
    return gcn_users, gcn_items


# ----------------------------------------------------------------------------
# Prediction + MSE + L2 over the batch (tiled, parallel, partial sums)
# ----------------------------------------------------------------------------
def pred_loss_kernel(avg_ref, u_ref, i_ref, s_ref, part_ref, *, batch, tile_b):
    # avg_ref : SMEM f32[1]           avg_rating
    # u_ref   : [tB, D] bf16          gathered gcn user embeddings
    # i_ref   : [tB, D] bf16          gathered gcn item embeddings
    # s_ref   : [tB, 8] f32           lane0=user_bias, 1=item_bias, 2=rating
    # part_ref: [1, 8, 128] f32       per-tile partial sums (lane-dense store)
    t = pl.program_id(0)
    u = u_ref[...].astype(jnp.float32)
    it = i_ref[...].astype(jnp.float32)
    s = s_ref[...]
    avg = avg_ref[0]

    # Mask rows that are batch padding (B not a multiple of tile_b).
    row = t * tile_b + jax.lax.broadcasted_iota(jnp.int32, (tile_b, 1), 0)
    valid = (row < batch).astype(jnp.float32)                     # [tB, 1]

    pred = (jnp.sum(u * it, axis=-1, keepdims=True)
            + s[:, 0:1] + s[:, 1:2] + avg)                        # [tB, 1]
    diff = (pred - s[:, 2:3]) * valid

    sum_sq_diff = jnp.sum(diff * diff)
    sum_u_sq = jnp.sum(u * u * valid)
    sum_i_sq = jnp.sum(it * it * valid)

    lane = jax.lax.broadcasted_iota(jnp.int32, (8, 128), 1)
    vals = jnp.where(lane == 0, sum_sq_diff,
                     jnp.where(lane == 1, sum_u_sq,
                               jnp.where(lane == 2, sum_i_sq, 0.0)))
    part_ref[...] = vals[None, :, :]


def prediction_loss(user, item, user_bias, item_bias, ratings, avg_rating,
                    *, tile_pref=BATCH_TILE):
    batch, dim = user.shape
    tile_b = _pick_tile(batch, tile_pref)
    b_pad = _round_up(batch, tile_b)

    # bf16 streaming of the two dominant inputs (sums stay f32 in-kernel).
    user_b = user.astype(jnp.bfloat16)
    item_b = item.astype(jnp.bfloat16)

    packed = jnp.concatenate(
        [user_bias.reshape(-1, 1).astype(jnp.float32),
         item_bias.reshape(-1, 1).astype(jnp.float32),
         ratings.astype(jnp.float32).reshape(-1, 1),
         jnp.zeros((batch, 5), jnp.float32)], axis=1)              # [B, 8]

    if b_pad != batch:
        pad = b_pad - batch
        user_b = jnp.pad(user_b, ((0, pad), (0, 0)))
        item_b = jnp.pad(item_b, ((0, pad), (0, 0)))
        packed = jnp.pad(packed, ((0, pad), (0, 0)))

    n_tiles = b_pad // tile_b
    avg = jnp.asarray(avg_rating, jnp.float32).reshape(1)

    kernel = functools.partial(pred_loss_kernel, batch=batch, tile_b=tile_b)
    parts = pl.pallas_call(
        kernel,
        out_shape=jax.ShapeDtypeStruct((n_tiles, 8, 128), jnp.float32),
        grid=(n_tiles,),
        in_specs=[
            pl.BlockSpec(memory_space=pltpu.MemorySpace.SMEM),     # avg_rating
            pl.BlockSpec((tile_b, dim), lambda t: (t, 0)),
            pl.BlockSpec((tile_b, dim), lambda t: (t, 0)),
            pl.BlockSpec((tile_b, 8), lambda t: (t, 0)),
        ],
        out_specs=pl.BlockSpec((1, 8, 128), lambda t: (t, 0, 0)),
        compiler_params=pltpu.CompilerParams(
            dimension_semantics=("parallel",),
            vmem_limit_bytes=VMEM_LIMIT),
    )(avg, user_b, item_b, packed)

    totals = jnp.sum(parts[:, 0, :], axis=0)        # [128]; lanes 0..2 used
    task = totals[0] / batch
    l2 = LAMADA * (totals[1] + totals[2]) / (batch * dim)
    loss = task + l2
    return loss, task, l2


# ----------------------------------------------------------------------------
# Parameter container mirroring GCN_bias.__init__ / forward
# ----------------------------------------------------------------------------
class GCNBiasParams:
    def __init__(self, key, user_num, item_num, factor_num,
                 user_item_matrix, item_user_matrix, d_i, d_j, avg_rating,
                 *, row_tile=ROW_TILE):
        self.user_num = user_num
        self.item_num = item_num
        self.factor_num = factor_num
        self.u_tile = _pick_tile(user_num, row_tile)
        self.i_tile = _pick_tile(item_num, row_tile)
        u_pad = _round_up(user_num, self.u_tile)
        i_pad = _round_up(item_num, self.i_tile)

        k1, k2, k3, k4 = jax.random.split(key, 4)
        eu = 0.01 * jax.random.normal(k1, (user_num, factor_num), jnp.float32)
        ei = 0.01 * jax.random.normal(k2, (item_num, factor_num), jnp.float32)
        # Pad parameters / constants ONCE (padded rows are zero and never
        # gathered; padded adjacency rows/cols are zero).
        self.embed_user = jnp.pad(eu, ((0, u_pad - user_num), (0, 0)))
        self.embed_item = jnp.pad(ei, ((0, i_pad - item_num), (0, 0)))
        self.user_bias = 0.01 * jax.random.normal(k3, (user_num, 1), jnp.float32)
        self.item_bias = 0.01 * jax.random.normal(k4, (item_num, 1), jnp.float32)

        uim = jnp.asarray(user_item_matrix, jnp.float32)              # [U, I]
        ium = jnp.asarray(item_user_matrix, jnp.float32)              # [I, U]
        # Constant adjacency: pad once and store bf16 (half DMA, one MXU pass).
        self.user_item_matrix = jnp.pad(
            uim, ((0, u_pad - user_num), (0, i_pad - item_num))).astype(jnp.bfloat16)
        self.item_user_matrix = jnp.pad(
            ium, ((0, i_pad - item_num), (0, u_pad - user_num))).astype(jnp.bfloat16)

        self.d_i = jnp.pad(jnp.reshape(d_i, (-1, 1)).astype(jnp.float32),
                           ((0, u_pad - user_num), (0, 0)))           # [U_pad, 1]
        self.d_j = jnp.pad(jnp.reshape(d_j, (-1, 1)).astype(jnp.float32),
                           ((0, i_pad - item_num), (0, 0)))           # [I_pad, 1]
        self.avg_rating = jnp.float32(avg_rating)

    def forward(self, user0, item_i0, ratings):
        gcn_users, gcn_items = gcn_propagate(
            self.user_item_matrix, self.item_user_matrix,
            self.embed_user, self.embed_item, self.d_i, self.d_j,
            u_tile=self.u_tile, i_tile=self.i_tile)
        # Embedding gathers (F.embedding) are plain-JAX glue (see TODO above).
        user = gcn_users[user0]                     # [B, D]
        item_i = gcn_items[item_i0]                 # [B, D]
        ub = self.user_bias[user0][:, 0]            # [B]
        ib = self.item_bias[item_i0][:, 0]          # [B]
        return prediction_loss(user, item_i, ub, ib, ratings, self.avg_rating)


# ----------------------------------------------------------------------------
# Pure-JAX reference (exact module semantics: f32 HIGHEST matmuls, unpadded)
# ----------------------------------------------------------------------------
def reference_forward(params, user0, item_i0, ratings):
    hp = jax.lax.Precision.HIGHEST
    U, I = params.user_num, params.item_num
    eu = params.embed_user[:U]
    ei = params.embed_item[:I]
    uim = params.user_item_matrix[:U, :I].astype(jnp.float32)   # bf16-exact values
    ium = params.item_user_matrix[:I, :U].astype(jnp.float32)
    d_i = params.d_i[:U]
    d_j = params.d_j[:I]

    g1u = jnp.maximum(jnp.dot(uim, ei, precision=hp) + eu * d_i, 0.0)
    g1i = jnp.maximum(jnp.dot(ium, eu, precision=hp) + ei * d_j, 0.0)
    g2u = jnp.maximum(jnp.dot(uim, g1i, precision=hp) + g1u * d_i, 0.0)
    g2i = jnp.maximum(jnp.dot(ium, g1u, precision=hp) + g1i * d_j, 0.0)
    gu = eu + g1u + g2u
    gi = ei + g1i + g2i

    user = gu[user0]
    item_i = gi[item_i0]
    ub = params.user_bias[user0][:, 0]
    ib = params.item_bias[item_i0][:, 0]
    pred = jnp.sum(user * item_i, axis=-1) + ub + ib + params.avg_rating
    r = ratings.astype(jnp.float32)
    task = jnp.mean((pred - r) ** 2)
    l2 = LAMADA * jnp.mean(user ** 2) + LAMADA * jnp.mean(item_i ** 2)
    return task + l2, task, l2


if __name__ == "__main__":
    USER_NUM, ITEM_NUM, FACTOR_NUM = 70, 100, 32   # exercise row padding paths
    BATCH = 500                                    # exercise batch masking path
    AVG_RATING = 3.5

    key = jax.random.PRNGKey(0)
    kadj, kp, ku, ki, kr = jax.random.split(key, 5)

    # Dense stand-in for the normalized sparse user-item adjacency.
    # 0.25 is exactly representable in bf16, so the bf16 adjacency storage is
    # lossless and the f32 reference sees identical adjacency values.
    mask = (jax.random.uniform(kadj, (USER_NUM, ITEM_NUM)) < 0.1).astype(jnp.float32)
    user_item_matrix = 0.25 * mask                      # [U, I]
    item_user_matrix = user_item_matrix.T               # [I, U]
    d_i = 1.0 / jnp.sqrt(1.0 + jnp.sum(mask, axis=1))   # [U]
    d_j = 1.0 / jnp.sqrt(1.0 + jnp.sum(mask, axis=0))   # [I]

    params = GCNBiasParams(kp, USER_NUM, ITEM_NUM, FACTOR_NUM,
                           user_item_matrix, item_user_matrix,
                           d_i, d_j, AVG_RATING)

    user0 = jax.random.randint(ku, (BATCH,), 0, USER_NUM, dtype=jnp.int32)
    item_i0 = jax.random.randint(ki, (BATCH,), 0, ITEM_NUM, dtype=jnp.int32)
    ratings = jax.random.uniform(kr, (BATCH,), jnp.float32, minval=1.0, maxval=5.0)

    loss, task_loss, l2 = params.forward(user0, item_i0, ratings)
    jax.block_until_ready((loss, task_loss, l2))

    ref_loss, ref_task, ref_l2 = reference_forward(params, user0, item_i0, ratings)
    # Tolerances account for the bf16 MXU / bf16-streaming path recommended by
    # the perf review (reference is f32 HIGHEST).
    assert jnp.allclose(loss, ref_loss, rtol=3e-3, atol=1e-5), (loss, ref_loss)
    assert jnp.allclose(task_loss, ref_task, rtol=3e-3, atol=1e-5), (task_loss, ref_task)
    assert jnp.allclose(l2, ref_l2, rtol=1e-2, atol=1e-9), (l2, ref_l2)

    print("KERNEL_OK")
</pallas_src>

<mosaic_0001>
module attributes {stable_mosaic.version = 11 : i64} {
  func.func @gcn_layer_kernel(%arg0: i32, %arg1: memref<80x112xbf16, #tpu.memory_space<vmem>>, %arg2: memref<112x32xbf16, #tpu.memory_space<vmem>>, %arg3: memref<80x32xf32, #tpu.memory_space<vmem>>, %arg4: memref<80x1xf32, #tpu.memory_space<vmem>>, %arg5: memref<80x32xf32, #tpu.memory_space<vmem>>) attributes {dimension_semantics = [#tpu.dimension_semantics<parallel>], iteration_bounds = array<i64: 1>, scalar_prefetch = 0 : i64, scratch_operands = 0 : i64, tpu.core_type = #tpu.core_type<tc>, window_params = [{transform_indices = @transform_0, window_bounds = array<i64: 80, 112>}, {pipeline_mode = #tpu.pipeline_mode<synchronous>, transform_indices = @transform_1, window_bounds = array<i64: 112, 32>}, {transform_indices = @transform_2, window_bounds = array<i64: 80, 32>}, {transform_indices = @transform_3, window_bounds = array<i64: 80, 1>}, {transform_indices = @transform_4, window_bounds = array<i64: 80, 32>}]} {
    %c0 = arith.constant 0 : index
    %c0_0 = arith.constant 0 : index
    %0 = vector.load %arg1[%c0, %c0_0] : memref<80x112xbf16, #tpu.memory_space<vmem>>, vector<80x112xbf16>
    %c0_1 = arith.constant 0 : index
    %c0_2 = arith.constant 0 : index
    %1 = vector.load %arg2[%c0_1, %c0_2] : memref<112x32xbf16, #tpu.memory_space<vmem>>, vector<112x32xbf16>
    %cst = arith.constant dense<0.000000e+00> : vector<80x32xf32>
    %2 = tpu.matmul %0, %1, %cst {dimension_numbers = #tpu.dot_dimension_numbers<[1], [0], [0], [1], [0, 0, 1, 1], [], []>} : vector<80x112xbf16>, vector<112x32xbf16>, vector<80x32xf32> -> vector<80x32xf32>
    %c0_3 = arith.constant 0 : index
    %c0_4 = arith.constant 0 : index
    %3 = vector.load %arg3[%c0_3, %c0_4] : memref<80x32xf32, #tpu.memory_space<vmem>>, vector<80x32xf32>
    %c0_5 = arith.constant 0 : index
    %c0_6 = arith.constant 0 : index
    %4 = vector.load %arg4[%c0_5, %c0_6] : memref<80x1xf32, #tpu.memory_space<vmem>>, vector<80x1xf32>
    %5 = vector.broadcast %4 : vector<80x1xf32> to vector<80x32xf32>
    %6 = arith.mulf %3, %5 : vector<80x32xf32>
    %7 = arith.addf %2, %6 : vector<80x32xf32>
    %cst_7 = arith.constant 0.000000e+00 : f32
    %8 = vector.broadcast %cst_7 : f32 to vector<80x32xf32>
    %9 = arith.maximumf %7, %8 : vector<80x32xf32>
    %c0_8 = arith.constant 0 : index
    %c0_9 = arith.constant 0 : index
    %10 = vector.load %arg5[%c0_8, %c0_9] : memref<80x32xf32, #tpu.memory_space<vmem>>, vector<80x32xf32>
    tpu.vector_store %arg5[%c0_8, %c0_9], %9 {strides = array<i32>} : memref<80x32xf32, #tpu.memory_space<vmem>>, vector<80x32xf32>,
    return
  }
  func.func @transform_0(%arg0: i32) -> (i32, i32) {
    %c0_i32 = arith.constant 0 : i32
    %c0_i32_0 = arith.constant 0 : i32
    return %arg0, %c0_i32 : i32, i32
  }
  func.func @transform_1(%arg0: i32) -> (i32, i32) {
    %c0_i32 = arith.constant 0 : i32
    %c0_i32_0 = arith.constant 0 : i32
    %c0_i32_1 = arith.constant 0 : i32
    return %c0_i32, %c0_i32_0 : i32, i32
  }
  func.func @transform_2(%arg0: i32) -> (i32, i32) {
    %c0_i32 = arith.constant 0 : i32
    %c0_i32_0 = arith.constant 0 : i32
    return %arg0, %c0_i32 : i32, i32
  }
  func.func @transform_3(%arg0: i32) -> (i32, i32) {
    %c0_i32 = arith.constant 0 : i32
    %c0_i32_0 = arith.constant 0 : i32
    return %arg0, %c0_i32 : i32, i32
  }
  func.func @transform_4(%arg0: i32) -> (i32, i32) {
    %c0_i32 = arith.constant 0 : i32
    %c0_i32_0 = arith.constant 0 : i32
    return %arg0, %c0_i32 : i32, i32
  }
}

</mosaic_0001>

<bundles_post_ra>
// kernel: tpu_custom_call.1
= control target key start
LH: loop header
LB: loop body
LE: loop exit
PB: predicated region body
PF: predicated region fallthrough
CT: control target
= control target key end

     0   :  { %9 = vsyncpa [#allocation3], 0  ;;  %s748_s0 = inlined_call_operand.hbm [shape: bf16[80,112], index: 0, kind: input, shape index: {}]   ;;  %s749_s1 = inlined_call_operand.hbm [shape: bf16[112,32], index: 1, kind: input, shape index: {}]   ;;  %s750_s2 = inlined_call_operand.hbm [shape: f32[80,32], index: 2, kind: input, shape index: {}]   ;;  %s751_s3 = inlined_call_operand.hbm [shape: f32[80,1], index: 3, kind: input, shape index: {}]   ;;  %s752_s4 = inlined_call_operand.hbm [shape: f32[80,32], index: 4, kind: output, shape index: {}]  }
   0x1   :  { %10 = vsyncpa [#allocation6], 0 }
   0x2   :  { %11 = vsyncpa [#allocation9], 0 }
   0x3   :  { %12 = vsyncpa [#allocation4], 0  ;;  %s595_s15 = smov [#allocation5]   ;;  %s596_s17 = smov [#allocation2]  }
   0x4   :  { %s30_s16 = sshll.u32 %s595_s15, 4  ;;  %s18_s18 = sshll.u32 %s596_s17, 4  ;;  %s31_s16 = int_to_ptr.vmem [resolvable:$true] %s30_s16  ;;  %s632_s18 = int_to_ptr.vmem [resolvable:$true] %s18_s18 }
   0x5   :  { %s477_s21 = scalar_lea.hbm %s749_s1, 896 }
   0x6   :  { %p478_p0 = scmp.ne.s32.totalorder %s749_s1, %s477_s21  ;;  %p481_p1 = scmp.lt.u32.totalorder %s477_s21, %s749_s1 }
   0x8   :  { %p483_p2 = pnand %p481_p1, %p478_p0 }
   0xa   :  { %486 = shalt.err (!%p483_p2)
}
   0xb   :  { %s487_s26 = scalar_lea.vmem %s31_s16, 896  ;;  %p492_p4 = scmp.lt.s32.totalorder %s31_s16, %s31_s16 }
   0xc   :  { %p488_p3 = scmp.ne.s32.totalorder %s31_s16, %s487_s26  ;;  %p493_p5 = scmp.lt.s32.totalorder %s487_s26, %s487_s26 }
   0xe   :  { %p494_p6 = por %p493_p5, %p492_p4 }
  0x10   :  { %p495_p7 = pnand %p494_p6, %p488_p3 }
  0x12   :  { %498 = shalt.err (!%p495_p7)
}
  0x13   :  { %s597_s27 = smov 64   ;;  %s598_s28 = smov 4  }
  0x14   :  { %36 = dma.hbm_to_vmem [thread:$0]  %s749_s1, 896, %s31_s16, [#allocation6], %s597_s27, %s597_s27, %s598_s28  }
  0x15   :  { %s499_s7 = scalar_lea.hbm %s748_s0, 640 }
  0x16   :  { %p500_p8 = scmp.ne.s32.totalorder %s748_s0, %s499_s7  ;;  %p503_p9 = scmp.lt.u32.totalorder %s499_s7, %s748_s0 }
  0x18   :  { %p505_p10 = pnand %p503_p9, %p500_p8 }
  0x1a   :  { %508 = shalt.err (!%p505_p10)
}
  0x1b   :  { %s509_s12 = scalar_lea.vmem %s632_s18, 640  ;;  %p514_p12 = scmp.lt.s32.totalorder %s632_s18, %s632_s18 }
  0x1c   :  { %p510_p11 = scmp.ne.s32.totalorder %s632_s18, %s509_s12  ;;  %p515_p13 = scmp.lt.s32.totalorder %s509_s12, %s509_s12 }
  0x1e   :  { %p516_p0 = por %p515_p13, %p514_p12 }
  0x20   :  { %p517_p1 = pnand %p516_p0, %p510_p11 }
  0x22   :  { %520 = shalt.err (!%p517_p1)
}
  0x23   :  { %24 = dma.hbm_to_vmem [thread:$0]  %s748_s0, 640, %s632_s18, [#allocation3], %s597_s27, %s597_s27, %s598_s28  }
  0x24   :  { %s599_s14 = smov [#allocation7]   ;;  %s521_s19 = scalar_lea.hbm %s750_s2, 1280 }
  0x25   :  { %s42_s15 = sshll.u32 %s599_s14, 4  ;;  %p522_p2 = scmp.ne.s32.totalorder %s750_s2, %s521_s19  ;;  %s43_s15 = int_to_ptr.vmem [resolvable:$true] %s42_s15 }
  0x26   :  { %p525_p3 = scmp.lt.u32.totalorder %s521_s19, %s750_s2 }
  0x28   :  { %p527_p4 = pnand %p525_p3, %p522_p2 }
  0x2a   :  { %530 = shalt.err (!%p527_p4)
}
  0x2b   :  { %s531_s24 = scalar_lea.vmem %s43_s15, 1280  ;;  %p536_p6 = scmp.lt.s32.totalorder %s43_s15, %s43_s15 }
  0x2c   :  { %p532_p5 = scmp.ne.s32.totalorder %s43_s15, %s531_s24  ;;  %p537_p7 = scmp.lt.s32.totalorder %s531_s24, %s531_s24 }
  0x2e   :  { %p538_p8 = por %p537_p7, %p536_p6 }
  0x30   :  { %p539_p9 = pnand %p538_p8, %p532_p5 }
  0x32   :  { %542 = shalt.err (!%p539_p9)
}
  0x33   :  { %s600_s0 = smov 128   ;;  %s601_s18 = smov 8  }
  0x34   :  { %48 = dma.hbm_to_vmem [thread:$0]  %s750_s2, 1280, %s43_s15, [#allocation6], %s600_s0, %s600_s0, %s601_s18  }
  0x35   :  { %s602_s27 = smov [#allocation8]   ;;  %s543_s5 = scalar_lea.hbm %s751_s3, 1280 }
  0x36   :  { %s54_s28 = sshll.u32 %s602_s27, 4  ;;  %p544_p10 = scmp.ne.s32.totalorder %s751_s3, %s543_s5  ;;  %s55_s28 = int_to_ptr.vmem [resolvable:$true] %s54_s28 }
  0x37   :  { %p547_p11 = scmp.lt.u32.totalorder %s543_s5, %s751_s3 }
  0x39   :  { %p549_p12 = pnand %p547_p11, %p544_p10 }
  0x3b   :  { %552 = shalt.err (!%p549_p12)
}
  0x3c   :  { %s553_s10 = scalar_lea.vmem %s55_s28, 1280  ;;  %p558_p0 = scmp.lt.s32.totalorder %s55_s28, %s55_s28 }
  0x3d   :  { %p554_p13 = scmp.ne.s32.totalorder %s55_s28, %s553_s10  ;;  %p559_p1 = scmp.lt.s32.totalorder %s553_s10, %s553_s10 }
  0x3f   :  { %p560_p2 = por %p559_p1, %p558_p0 }
  0x41   :  { %p561_p3 = pnand %p560_p2, %p554_p13 }
  0x43   :  { %564 = shalt.err (!%p561_p3)
}
  0x44   :  { %60 = dma.hbm_to_vmem [thread:$0]  %s751_s3, 1280, %s55_s28, [#allocation9], %s600_s0, %s600_s0, %s601_s18  }
  0x45   :  { %587 = dma.done.wait [#allocation3], 640  }
  0x46   :  { %588 = vsyncadd [#allocation3], 4294966656 }
  0x47   :  { %589 = dma.done.wait [#allocation6], 2176  }
  0x48   :  { %590 = vsyncadd [#allocation6], 4294965120 }
  0x49   :  { %591 = dma.done.wait [#allocation9], 1280  }
  0x4a   :  { %592 = vsyncadd [#allocation9], 4294966016  ;;  %v603_v0 = vmov 0.0   ;;  %vm604_vm0 = vmmov 0   ;;  %v605_v1 = vmov 0   ;;  %v465_v2 = vld [vmem:[#allocation5] sm:$0xff]  }
  0x4b   :  { %403 = vmatprep.subr.bf16.mxu0 %v603_v0  ;;  %437 = vmatprep.subr.bf16.mxu1 %v603_v0  ;;  %v466_v3 = vld [vmem:[#allocation5 + $0x8] sm:$0xff]   ;;  %v467_v4 = vld [vmem:[#allocation5 + $0x10] sm:$0xff]   ;;  %v468_v5 = vld [vmem:[#allocation5 + $0x18] sm:$0xff]   ;;  %vm245_vm1 = vcmask 916480   ;;  %vm344_vm2 = vcmask 261120   ;;  %s606_s3 = smov [#allocation10]  }
  0x4c   :  { %417 = vmatprep.mubr.msk.bf16.mxu0 %vm604_vm0, %v603_v0  ;;  %429 = vmatprep.mubr.msk.bf16.mxu1 %vm604_vm0, %v603_v0  ;;  %v110_v6 = vld [vmem:[#allocation8 + $0x10] sm:$0xff]  ;;  %v108_v7 = vld [vmem:[#allocation8] sm:$0xff]  ;;  %v469_v8 = vld [vmem:[#allocation5 + $0x20] sm:$0xff]   ;;  %s360_s12 = sshll.u32 %s606_s3, 4  ;;  %s361_s12 = int_to_ptr.vmem [resolvable:$true] %s360_s12 }
  0x4d   :  { %464 = vset.pattern.permute.xlu1 %v605_v1  ;;  %463 = vset.pattern.permute.xlu0 %v605_v1  ;;  %v111_v9 = vld [vmem:[#allocation8 + $0x18] sm:$0xff]  ;;  %v109_v10 = vld [vmem:[#allocation8 + $0x8] sm:$0xff]  ;;  %v470_v11 = vld [vmem:[#allocation5 + $0x28] sm:$0xff]   ;;  %s565_s1 = scalar_lea.vmem %s361_s12, 1280  ;;  %p570_p5 = scmp.lt.s32.totalorder %s361_s12, %s361_s12 }
  0x4e   :  { %404 = vmatpush3.bf16.msra.mxu0 %v465_v2  ;;  %444 = vmatpush3.bf16.msra.mxu1 %v465_v2  ;;  %v113_v12 = vld [vmem:[#allocation8 + $0x28] sm:$0xff]  ;;  %v112_v13 = vld [vmem:[#allocation8 + $0x20] sm:$0xff]  ;;  %v115_v15 = vld [vmem:[#allocation8 + $0x38] sm:$0xff]  ;;  %p566_p4 = scmp.ne.s32.totalorder %s361_s12, %s565_s1  ;;  %p571_p6 = scmp.lt.s32.totalorder %s565_s1, %s565_s1 }
  0x4f   :  { %405 = vmatprep.subr.bf16.mxu0 %v603_v0  ;;  %438 = vmatprep.subr.bf16.mxu1 %v603_v0  ;;  %v471_v14 = vld [vmem:[#allocation5 + $0x30] sm:$0xff]   ;;  %v114_v16 = vld [vmem:[#allocation8 + $0x30] sm:$0xff]  ;;  %v116_v20 = vld [vmem:[#allocation8 + $0x40] sm:$0xff] }
  0x50   :  { %130 = vperm.xlu1 %464, %v110_v6   ;;  %120 = vperm.xlu0 %463, %v108_v7   ;;  %v472_v17 = vld [vmem:[#allocation2] sm:$0xff]   ;;  %v473_v18 = vld [vmem:[#allocation2 + $0x18] sm:$0xff]   ;;  %v474_v21 = vld [vmem:[#allocation2 + $0x8] sm:$0xff]   ;;  %p572_p7 = por %p571_p6, %p570_p5 }
  0x51   :  { %v117_v19 = vld [vmem:[#allocation8 + $0x48] sm:$0xff]  ;;  %v475_v22 = vld [vmem:[#allocation2 + $0x20] sm:$0xff]   ;;  %v476_v23 = vld [vmem:[#allocation2 + $0x10] sm:$0xff]  }
  0x52   :  { %406 = vmatpush3.bf16.msra.mxu0 %v466_v3  ;;  %445 = vmatpush3.bf16.msra.mxu1 %v466_v3  ;;  %v98_v30 = vld [vmem:[#allocation7] sm:$0xff]  ;;  %v104_v31 = vld [vmem:[#allocation7 + $0x30] sm:$0xff]  ;;  %v99_v32 = vld [vmem:[#allocation7 + $0x8] sm:$0xff]  ;;  %p573_p8 = pnand %p572_p7, %p566_p4 }
  0x53   :  { %407 = vmatprep.subr.bf16.mxu0 %v603_v0  ;;  %439 = vmatprep.subr.bf16.mxu1 %v603_v0  ;;  %v105_v33 = vld [vmem:[#allocation7 + $0x38] sm:$0xff]  ;;  %v100_v54 = vld [vmem:[#allocation7 + $0x10] sm:$0xff]  ;;  %v106_v56 = vld [vmem:[#allocation7 + $0x40] sm:$0xff] }
  0x54   :  { %135 = vperm.xlu1 %464, %v111_v9   ;;  %125 = vperm.xlu0 %463, %v109_v10   ;;  %v101_v59 = vld [vmem:[#allocation7 + $0x18] sm:$0xff]  ;;  %v107_v61 = vld [vmem:[#allocation7 + $0x48] sm:$0xff] }
  0x56   :  { %408 = vmatpush3.bf16.msra.mxu0 %v467_v4  ;;  %446 = vmatpush3.bf16.msra.mxu1 %v467_v4 }
  0x57   :  { %409 = vmatprep.subr.bf16.mxu0 %v603_v0  ;;  %440 = vmatprep.subr.bf16.mxu1 %v603_v0 }
  0x58   :  { %145 = vperm.xlu1 %464, %v113_v12   ;;  %140 = vperm.xlu0 %463, %v112_v13  }
  0x5a   :  { %410 = vmatpush3.bf16.msra.mxu0 %v468_v5  ;;  %447 = vmatpush3.bf16.msra.mxu1 %v468_v5 }
  0x5b   :  { %411 = vmatprep.subr.bf16.mxu0 %v603_v0  ;;  %441 = vmatprep.subr.bf16.mxu1 %v603_v0 }
  0x5c   :  { %155 = vperm.xlu1 %464, %v115_v15   ;;  %150 = vperm.xlu0 %463, %v114_v16   ;;  %v102_v16 = vld [vmem:[#allocation7 + $0x20] sm:$0xff] }
  0x5e   :  { %412 = vmatpush3.bf16.msra.mxu0 %v469_v8  ;;  %448 = vmatpush3.bf16.msra.mxu1 %v469_v8 }
  0x5f   :  { %413 = vmatprep.subr.bf16.mxu0 %v603_v0  ;;  %442 = vmatprep.subr.bf16.mxu1 %v603_v0 }
  0x60   :  { %165 = vperm.xlu1 %464, %v117_v19   ;;  %160 = vperm.xlu0 %463, %v116_v20   ;;  %v103_v19 = vld [vmem:[#allocation7 + $0x28] sm:$0xff] }
  0x62   :  { %414 = vmatpush3.bf16.msra.mxu0 %v470_v11  ;;  %449 = vmatpush3.bf16.msra.mxu1 %v470_v11 }
  0x63   :  { %415 = vmatprep.subr.bf16.mxu0 %v603_v0  ;;  %443 = vmatprep.subr.bf16.mxu1 %v603_v0 }
  0x66   :  { %416 = vmatpush3.bf16.msra.mxu0 %v471_v14  ;;  %450 = vmatpush3.bf16.msra.mxu1 %v471_v14 }
  0x69   :  { %418 = vmatmul.mubr.msk.bf16.vlgmr.msra.gmra.mrb[0].mxu0 %vm245_vm1, %v472_v17  ;;  %430 = vmatmul.mubr.msk.bf16.vlgmr.msra.gmra.mrb[0].mxu1 %vm245_vm1, %v473_v18 }
  0x6a   :  { %421 = vmatprep.mubr.msk.bf16.mxu0 %vm604_vm0, %v603_v0  ;;  %433 = vmatprep.mubr.msk.bf16.mxu1 %vm604_vm0, %v603_v0 }
  0x71   :  { %422 = vmatmul.mubr.msk.bf16.gmra.mrb[4].mxu0 %vm245_vm1, %v474_v21  ;;  %434 = vmatmul.mubr.msk.bf16.gmra.mrb[4].mxu1 %vm245_vm1, %v475_v22 }
  0x72   :  { %425 = vmatprep.mubr.msk.bf16.mxu0 %vm604_vm0, %v603_v0 }
  0x79   :  { %426 = vmatmul.mubr.msk.bf16.gmra.mrb[8].mxu0 %vm245_vm1, %v476_v23 }
  0xcf   :  { %v121_v24 = vpop.permute.xlu0 %120  ;;  %v131_v25 = vpop.permute.xlu1 %130 }
  0xd0   :  { %v168_v35 = vmul.f32 %v121_v24, %v98_v30  ;;  %v170_v62 = vmul.f32 %v131_v25, %v100_v54 }
  0xd3   :  { %v126_v26 = vpop.permute.xlu0 %125  ;;  %v136_v27 = vpop.permute.xlu1 %135 }
  0xd4   :  { %v169_v38 = vmul.f32 %v126_v26, %v99_v32  ;;  %v171_v2 = vmul.f32 %v136_v27, %v101_v59 }
  0xd7   :  { %v717_v28 = vpop.permute.xlu0 %140  ;;  %v719_v29 = vpop.permute.xlu1 %145 }
  0xd8   :  { %v172_v20 = vmul.f32 %v717_v28, %v102_v16  ;;  %v173_v22 = vmul.f32 %v719_v29, %v103_v19 }
  0xdb   :  { %v151_v34 = vpop.permute.xlu0 %150  ;;  %v156_v37 = vpop.permute.xlu1 %155 }
  0xdc   :  { %v174_v36 = vmul.f32 %v151_v34, %v104_v31  ;;  %v175_v39 = vmul.f32 %v156_v37, %v105_v33 }
  0xdf   :  { %v161_v55 = vpop.permute.xlu0 %160  ;;  %v166_v60 = vpop.permute.xlu1 %165 }
  0xe0   :  { %v176_v63 = vmul.f32 %v161_v55, %v106_v56  ;;  %v177_v3 = vmul.f32 %v166_v60, %v107_v61 }
 0x13c   :  { %v295_v40 = vpop.f32.mrb[0].mxu0  ;;  %v319_v41 = vpop.f32.mrb[0].mxu1 }
 0x13d   :  { %v296_v42 = vadd.f32 %v295_v40, %v168_v35  ;;  %v320_v43 = vadd.f32 %v319_v41, %v174_v36  ;;  %v419_v44 = vpop.f32.mrb[1].mxu0  ;;  %v431_v45 = vpop.f32.mrb[1].mxu1 }
 0x13e   :  { %v298_v46 = vpop.f32.mrb[2].mxu0  ;;  %v322_v47 = vpop.f32.mrb[2].mxu1 }
 0x13f   :  { %v334_v48 = vmax.f32 %v296_v42, 0.0  ;;  %v340_v49 = vmax.f32 %v320_v43, 0.0  ;;  %v299_v50 = vadd.f32 %v298_v46, %v169_v38  ;;  %v323_v51 = vadd.f32 %v322_v47, %v175_v39  ;;  %v420_v52 = vpop.f32.mrb[3].mxu0  ;;  %v432_v53 = vpop.f32.mrb[3].mxu1 }
 0x141   :  { %345 = vst.msk [vmem:[#allocation10] sm:$0xff] %vm344_vm2, %v334_v48  ;;  %351 = vst.msk [vmem:[#allocation10 + $0x30] sm:$0xff] %vm344_vm2, %v340_v49  ;;  %v335_v57 = vmax.f32 %v299_v50, 0.0  ;;  %v341_v58 = vmax.f32 %v323_v51, 0.0 }
 0x143   :  { %346 = vst.msk [vmem:[#allocation10 + $0x8] sm:$0xff] %vm344_vm2, %v335_v57  ;;  %352 = vst.msk [vmem:[#allocation10 + $0x38] sm:$0xff] %vm344_vm2, %v341_v58 }
 0x144   :  { %v303_v0 = vpop.f32.mrb[4].mxu0  ;;  %v327_v1 = vpop.f32.mrb[4].mxu1 }
 0x145   :  { %v304_v4 = vadd.f32 %v303_v0, %v170_v62  ;;  %v328_v5 = vadd.f32 %v327_v1, %v176_v63  ;;  %v423_v6 = vpop.f32.mrb[5].mxu0  ;;  %v435_v7 = vpop.f32.mrb[5].mxu1 }
 0x146   :  { %v306_v8 = vpop.f32.mrb[6].mxu0  ;;  %v330_v9 = vpop.f32.mrb[6].mxu1 }
 0x147   :  { %v336_v10 = vmax.f32 %v304_v4, 0.0  ;;  %v342_v11 = vmax.f32 %v328_v5, 0.0  ;;  %v307_v12 = vadd.f32 %v306_v8, %v171_v2  ;;  %v331_v13 = vadd.f32 %v330_v9, %v177_v3  ;;  %v424_v14 = vpop.f32.mrb[7].mxu0  ;;  %v436_v15 = vpop.f32.mrb[7].mxu1 }
 0x149   :  { %347 = vst.msk [vmem:[#allocation10 + $0x10] sm:$0xff] %vm344_vm2, %v336_v10  ;;  %353 = vst.msk [vmem:[#allocation10 + $0x40] sm:$0xff] %vm344_vm2, %v342_v11  ;;  %v337_v17 = vmax.f32 %v307_v12, 0.0  ;;  %v343_v18 = vmax.f32 %v331_v13, 0.0 }
 0x14b   :  { %348 = vst.msk [vmem:[#allocation10 + $0x18] sm:$0xff] %vm344_vm2, %v337_v17  ;;  %354 = vst.msk [vmem:[#allocation10 + $0x48] sm:$0xff] %vm344_vm2, %v343_v18 }
 0x14c   :  { %v311_v21 = vpop.f32.mrb[8].mxu0 }
 0x14d   :  { %v312_v23 = vadd.f32 %v311_v21, %v172_v20  ;;  %v427_v24 = vpop.f32.mrb[9].mxu0 }
 0x14e   :  { %v314_v25 = vpop.f32.mrb[10].mxu0 }
 0x14f   :  { %v338_v26 = vmax.f32 %v312_v23, 0.0  ;;  %v315_v27 = vadd.f32 %v314_v25, %v173_v22  ;;  %v428_v30 = vpop.f32.mrb[11].mxu0 }
 0x151   :  { %349 = vst.msk [vmem:[#allocation10 + $0x20] sm:$0xff] %vm344_vm2, %v338_v26  ;;  %v339_v31 = vmax.f32 %v315_v27, 0.0 }
 0x153   :  { %350 = vst.msk [vmem:[#allocation10 + $0x28] sm:$0xff] %vm344_vm2, %v339_v31 }
 0x154   :  { %576 = shalt.err (!%p573_p8)
}
 0x155   :  { %s577_s15 = scalar_lea.hbm %s752_s4, 1280 }
 0x156   :  { %p578_p9 = scmp.ne.s32.totalorder %s752_s4, %s577_s15  ;;  %p581_p10 = scmp.lt.u32.totalorder %s577_s15, %s752_s4 }
 0x158   :  { %p583_p11 = pnand %p581_p10, %p578_p9 }
 0x15a   :  { %586 = shalt.err (!%p583_p11)
}
 0x15b   :  { %366 = dma.vmem_to_hbm [thread:$0]  %s361_s12, 1280, %s752_s4, [#allocation4], %s600_s0, %s600_s0, %s601_s18  }
 0x15c   :  { %593 = dma.done.wait [#allocation4], 1280  }
 0x15d   :  { %594 = vsyncadd [#allocation4], 4294966016 }
 0x15e   :  { %370 = vsyncpa [#allocation3], 1 }
 0x15f   :  { %371 = vsyncpa [#allocation6], 1 }
 0x160   :  { %372 = vsyncpa [#allocation9], 1 }
 0x161   :  { %373 = vsyncpa [#allocation4], 1 }

</bundles_post_ra>
